<compile_context>
chip_gen: v7x
topology: tpu7x:2x2x1
jax: 0.10.0
libtpu: 0.0.40
codegen_flags: <defaults>
</compile_context>

<pallas_src>
import functools
import math

import jax
import jax.numpy as jnp
from jax.experimental import pallas as pl
from jax.experimental.pallas import tpu as pltpu


_LANE = 128
_MAX_TB = 16          # cap on batches per block (bounds in-kernel unroll size)


def _cdiv(a, b):
    return -(-a // b)


@functools.lru_cache(maxsize=1)
def _tpu_params():
    """Returns (vmem_block_budget_bytes, has_two_tensorcores, vmem_capacity_bytes)."""
    vmem_cap = None
    try:
        vmem_cap = int(pltpu.get_tpu_info().vmem_capacity_bytes)
    except Exception:
        vmem_cap = None
    kind = ""
    try:
        kind = jax.devices()[0].device_kind.lower()
    except Exception:
        pass
    two_tc = "v7" in kind
    if vmem_cap is None:
        vmem_cap = (64 << 20) if two_tc else (128 << 20)
    # Large-VMEM parts (v5e/v6e, 128 MiB): generous block budget to amortize the
    # ~0.35 us per-grid-step overhead.  v7x (64 MiB/TC): conservative so blocks +
    # temporaries + internal scratch stay well under the physical limit.
    budget = (48 << 20) if vmem_cap >= (100 << 20) else (20 << 20)
    return budget, two_tc, vmem_cap


def _decomp_kernel(x_ref, res_ref, mean_ref, *, kernel_size, seq_len, use_cumsum):
    """Block = (TB, L, TC).  Moving average along axis 1 (sublanes), per batch slice."""
    pad = (kernel_size - 1) // 2
    tb, _, tc = x_ref.shape
    inv_k = 1.0 / kernel_size
    row = jax.lax.broadcasted_iota(jnp.int32, (seq_len, tc), 0)   # hoisted

    for b in range(tb):
        x = x_ref[b].astype(jnp.float32)                          # (L, TC)
        x0 = jnp.broadcast_to(x[0:1, :], (seq_len, tc))
        xl = jnp.broadcast_to(x[seq_len - 1:seq_len, :], (seq_len, tc))

        if pad == 0:
            mean = x
        elif use_cumsum:
            # O(log L) prefix-sum window mean (replaces the old MXU (L,L) matmul
            # path): Hillis-Steele inclusive scan via sublane rolls (XLU).
            cs = x
            shift = 1
            while shift < seq_len:
                rolled = pltpu.roll(cs, shift, axis=0)            # rolled[t] = cs[t-shift]
                cs = cs + jnp.where(row >= shift, rolled, 0.0)
                shift *= 2
            total = jnp.broadcast_to(cs[seq_len - 1:seq_len, :], (seq_len, tc))
            # upper[t] = cs[min(t+pad, L-1)]
            upper = jnp.where(row < seq_len - pad,
                              pltpu.roll(cs, (seq_len - pad) % seq_len, axis=0),
                              total)
            # lower[t] = cs[t-pad-1] if t-pad-1 >= 0 else 0
            lower = jnp.where(row >= pad + 1,
                              pltpu.roll(cs, (pad + 1) % seq_len, axis=0),
                              0.0)
            # Replicate-pad corrections (nonzero only on the edge strips).
            front = jnp.maximum(pad - row, 0).astype(jnp.float32)
            back = jnp.maximum(row - (seq_len - 1 - pad), 0).astype(jnp.float32)
            mean = (upper - lower + front * x0 + back * xl) * inv_k
        else:
            # Small-pad path: clamped sliding sum via sublane rolls.
            acc = x
            for d in range(1, pad + 1):
                fwd = pltpu.roll(x, (seq_len - d) % seq_len, axis=0)   # x[t+d mod L]
                bwd = pltpu.roll(x, d % seq_len, axis=0)               # x[t-d mod L]
                acc = acc + jnp.where(row < seq_len - d, fwd, xl)
                acc = acc + jnp.where(row >= d, bwd, x0)
            mean = acc * inv_k

        mean_ref[b] = mean.astype(mean_ref.dtype)
        res_ref[b] = (x - mean).astype(res_ref.dtype)


def series_decomp(x, kernel_size):
    """x: (B, L, C). Returns (res, moving_mean), both (B, L, C)."""
    B, L, C = x.shape
    pad = (kernel_size - 1) // 2
    out_len = L + 2 * pad - kernel_size + 1
    assert out_len == L, "series_decomp assumes odd kernel_size (stride=1, out_len == L)"

    itemsize = x.dtype.itemsize
    budget, two_tc, vmem_cap = _tpu_params()

    # Lane tile over channels: full C unless C is a large multiple of 128 whose
    # (1 in + 2 out, double-buffered) block exceeds the budget.
    if C % _LANE == 0 and 6 * L * C * itemsize > budget:
        TC = max(_LANE, (budget // (6 * L * itemsize)) // _LANE * _LANE)
        TC = min(TC, C)
        while C % TC:            # keep TC dividing C (C is a multiple of 128)
            TC -= _LANE
    else:
        TC = C

    # Batch tile: as many batches per block as the VMEM budget allows.
    per_batch = 6 * L * TC * itemsize
    TB = max(1, min(B, _MAX_TB, budget // per_batch))
    nb, nc = _cdiv(B, TB), _cdiv(C, TC)
    # v7x only: keep an even number (>= 2) of grid steps so both TensorCores
    # get equal work under dimension_semantics=("parallel", "parallel").
    if two_tc and B > 1 and (nb * nc) % 2 == 1:
        target_nb = max(2, 2 * ((nb + 1) // 2))
        TB = _cdiv(B, target_nb)
        nb = _cdiv(B, TB)

    # Prefix-sum path when the clamped-roll path would start saturating the VALU.
    use_cumsum = (2 * pad) > (math.ceil(math.log2(max(L, 2))) + 4)

    # Explicit VMEM limit from the actual footprint: double-buffered blocks +
    # in-kernel f32 temporaries + margin for internal scratch.
    block_bytes = 6 * TB * L * TC * itemsize
    temp_bytes = 12 * L * TC * 4
    vmem_limit = block_bytes + temp_bytes + (4 << 20)
    vmem_limit = int(min(vmem_limit, int(0.95 * vmem_cap)))

    spec = lambda: pl.BlockSpec((TB, L, TC), lambda b, c: (b, 0, c))  # noqa: E731
    kernel = functools.partial(
        _decomp_kernel, kernel_size=kernel_size, seq_len=L, use_cumsum=use_cumsum
    )
    per_elem_flops = (3 * max(1, math.ceil(math.log2(max(L, 2)))) + 8) if use_cumsum \
        else (6 * pad + 1)

    res, mean = pl.pallas_call(
        kernel,
        out_shape=(
            jax.ShapeDtypeStruct((B, L, C), x.dtype),
            jax.ShapeDtypeStruct((B, L, C), x.dtype),
        ),
        grid_spec=pltpu.PrefetchScalarGridSpec(
            num_scalar_prefetch=0,
            grid=(nb, nc),
            in_specs=[spec()],
            out_specs=[spec(), spec()],
        ),
        compiler_params=pltpu.CompilerParams(
            dimension_semantics=("parallel", "parallel"),
            vmem_limit_bytes=vmem_limit,
        ),
        cost_estimate=pl.CostEstimate(
            flops=per_elem_flops * B * L * C,
            transcendentals=0,
            bytes_accessed=3 * B * L * C * itemsize,
        ),
    )(x)
    return res, mean


def _reference(x, kernel_size):
    # Pure-JAX (f32) reference mirroring the PyTorch module.
    xf = x.astype(jnp.float32)
    pad = (kernel_size - 1) // 2
    front = jnp.repeat(xf[:, 0:1, :], pad, axis=1)
    end = jnp.repeat(xf[:, -1:, :], pad, axis=1)
    xp = jnp.concatenate([front, xf, end], axis=1)            # (B, L+2p, C)
    windows = jnp.stack(
        [xp[:, j:j + x.shape[1], :] for j in range(kernel_size)], axis=0
    )
    mean = jnp.mean(windows, axis=0)
    return xf - mean, mean


def _check(x, kernel_size, atol, rtol):
    res, mean = series_decomp(x, kernel_size)
    jax.block_until_ready((res, mean))
    res_ref, mean_ref = _reference(x, kernel_size)
    assert jnp.allclose(res.astype(jnp.float32), res_ref, atol=atol, rtol=rtol), \
        f"res mismatch (K={kernel_size}, shape={x.shape}, dtype={x.dtype})"
    assert jnp.allclose(mean.astype(jnp.float32), mean_ref, atol=atol, rtol=rtol), \
        f"mean mismatch (K={kernel_size}, shape={x.shape}, dtype={x.dtype})"


if __name__ == "__main__":
    key = jax.random.PRNGKey(0)
    k1, k2, k3 = jax.random.split(key, 3)

    # Small-K clamped-roll path.
    x = jax.random.normal(k1, (2, 16, 8), dtype=jnp.float32)
    _check(x, 5, atol=1e-5, rtol=1e-5)

    # Large-K prefix-sum path (DLinear default K=25), heavy replicate-pad edges.
    _check(x, 25, atol=1e-5, rtol=1e-5)

    # Odd batch, channels not a multiple of 128, multi-batch block / batch loop.
    x2 = jax.random.normal(k2, (3, 40, 5), dtype=jnp.float32)
    _check(x2, 7, atol=1e-5, rtol=1e-5)

    # bf16 input exercises dtype-derived tiling; outputs rounded to bf16.
    x3 = jax.random.normal(k3, (2, 16, 8), dtype=jnp.bfloat16)
    _check(x3, 25, atol=5e-2, rtol=5e-2)

    print("KERNEL_OK")
</pallas_src>

<mosaic_0001>
module attributes {stable_mosaic.version = 11 : i64} {
  func.func @_decomp_kernel(%arg0: i32, %arg1: i32, %arg2: memref<2x16x8xf32, #tpu.memory_space<vmem>>, %arg3: memref<2x16x8xf32, #tpu.memory_space<vmem>>, %arg4: memref<2x16x8xf32, #tpu.memory_space<vmem>>) attributes {dimension_semantics = [#tpu.dimension_semantics<parallel>, #tpu.dimension_semantics<parallel>], iteration_bounds = array<i64: 1, 1>, scalar_prefetch = 0 : i64, scratch_operands = 0 : i64, tpu.core_type = #tpu.core_type<tc>, window_params = [{transform_indices = @transform_0, window_bounds = array<i64: 2, 16, 8>}, {transform_indices = @transform_1, window_bounds = array<i64: 2, 16, 8>}, {transform_indices = @transform_2, window_bounds = array<i64: 2, 16, 8>}]} {
    %0 = tpu.iota {dimensions = array<i32: 0>} : vector<16x8xi32>
    %c0 = arith.constant 0 : index
    %c0_0 = arith.constant 0 : index
    %c0_1 = arith.constant 0 : index
    %1 = vector.load %arg2[%c0, %c0_0, %c0_1] : memref<2x16x8xf32, #tpu.memory_space<vmem>>, vector<1x16x8xf32>
    %2 = vector.shape_cast %1 : vector<1x16x8xf32> to vector<16x8xf32>
    %3 = vector.extract_strided_slice %2 {offsets = [0, 0], sizes = [1, 8], strides = [1, 1]} : vector<16x8xf32> to vector<1x8xf32>
    %4 = vector.shape_cast %3 : vector<1x8xf32> to vector<1x8xf32>
    %5 = vector.broadcast %4 : vector<1x8xf32> to vector<16x8xf32>
    %6 = vector.extract_strided_slice %2 {offsets = [15, 0], sizes = [1, 8], strides = [1, 1]} : vector<16x8xf32> to vector<1x8xf32>
    %7 = vector.shape_cast %6 : vector<1x8xf32> to vector<1x8xf32>
    %8 = vector.broadcast %7 : vector<1x8xf32> to vector<16x8xf32>
    %c15_i32 = arith.constant 15 : i32
    %9 = tpu.dynamic_rotate %2 by %c15_i32 dim 0 : vector<16x8xf32>, i32 -> vector<16x8xf32>
    %c1_i32 = arith.constant 1 : i32
    %10 = tpu.dynamic_rotate %2 by %c1_i32 dim 0 : vector<16x8xf32>, i32 -> vector<16x8xf32>
    %c15_i32_2 = arith.constant 15 : i32
    %11 = vector.broadcast %c15_i32_2 : i32 to vector<16x8xi32>
    %12 = arith.cmpi slt, %0, %11 : vector<16x8xi32>
    %13 = arith.select %12, %9, %8 : vector<16x8xi1>, vector<16x8xf32>
    %14 = arith.addf %2, %13 : vector<16x8xf32>
    %c1_i32_3 = arith.constant 1 : i32
    %15 = vector.broadcast %c1_i32_3 : i32 to vector<16x8xi32>
    %16 = arith.cmpi sge, %0, %15 : vector<16x8xi32>
    %17 = arith.select %16, %10, %5 : vector<16x8xi1>, vector<16x8xf32>
    %18 = arith.addf %14, %17 : vector<16x8xf32>
    %c14_i32 = arith.constant 14 : i32
    %19 = tpu.dynamic_rotate %2 by %c14_i32 dim 0 : vector<16x8xf32>, i32 -> vector<16x8xf32>
    %c2_i32 = arith.constant 2 : i32
    %20 = tpu.dynamic_rotate %2 by %c2_i32 dim 0 : vector<16x8xf32>, i32 -> vector<16x8xf32>
    %c14_i32_4 = arith.constant 14 : i32
    %21 = vector.broadcast %c14_i32_4 : i32 to vector<16x8xi32>
    %22 = arith.cmpi slt, %0, %21 : vector<16x8xi32>
    %23 = arith.select %22, %19, %8 : vector<16x8xi1>, vector<16x8xf32>
    %24 = arith.addf %18, %23 : vector<16x8xf32>
    %c2_i32_5 = arith.constant 2 : i32
    %25 = vector.broadcast %c2_i32_5 : i32 to vector<16x8xi32>
    %26 = arith.cmpi sge, %0, %25 : vector<16x8xi32>
    %27 = arith.select %26, %20, %5 : vector<16x8xi1>, vector<16x8xf32>
    %28 = arith.addf %24, %27 : vector<16x8xf32>
    %cst = arith.constant 2.000000e-01 : f32
    %29 = vector.broadcast %cst : f32 to vector<16x8xf32>
    %30 = arith.mulf %28, %29 : vector<16x8xf32>
    %c0_6 = arith.constant 0 : index
    %c0_7 = arith.constant 0 : index
    %c0_8 = arith.constant 0 : index
    %31 = vector.load %arg4[%c0_6, %c0_7, %c0_8] : memref<2x16x8xf32, #tpu.memory_space<vmem>>, vector<1x16x8xf32>
    %32 = vector.shape_cast %31 : vector<1x16x8xf32> to vector<16x8xf32>
    %33 = vector.shape_cast %30 : vector<16x8xf32> to vector<1x16x8xf32>
    tpu.vector_store %arg4[%c0_6, %c0_7, %c0_8], %33 {strides = array<i32>} : memref<2x16x8xf32, #tpu.memory_space<vmem>>, vector<1x16x8xf32>,
    %34 = arith.subf %2, %30 : vector<16x8xf32>
    %c0_9 = arith.constant 0 : index
    %c0_10 = arith.constant 0 : index
    %c0_11 = arith.constant 0 : index
    %35 = vector.load %arg3[%c0_9, %c0_10, %c0_11] : memref<2x16x8xf32, #tpu.memory_space<vmem>>, vector<1x16x8xf32>
    %36 = vector.shape_cast %35 : vector<1x16x8xf32> to vector<16x8xf32>
    %37 = vector.shape_cast %34 : vector<16x8xf32> to vector<1x16x8xf32>
    tpu.vector_store %arg3[%c0_9, %c0_10, %c0_11], %37 {strides = array<i32>} : memref<2x16x8xf32, #tpu.memory_space<vmem>>, vector<1x16x8xf32>,
    %c1 = arith.constant 1 : index
    %c0_12 = arith.constant 0 : index
    %c0_13 = arith.constant 0 : index
    %38 = vector.load %arg2[%c1, %c0_12, %c0_13] : memref<2x16x8xf32, #tpu.memory_space<vmem>>, vector<1x16x8xf32>
    %39 = vector.shape_cast %38 : vector<1x16x8xf32> to vector<16x8xf32>
    %40 = vector.extract_strided_slice %39 {offsets = [0, 0], sizes = [1, 8], strides = [1, 1]} : vector<16x8xf32> to vector<1x8xf32>
    %41 = vector.shape_cast %40 : vector<1x8xf32> to vector<1x8xf32>
    %42 = vector.broadcast %41 : vector<1x8xf32> to vector<16x8xf32>
    %43 = vector.extract_strided_slice %39 {offsets = [15, 0], sizes = [1, 8], strides = [1, 1]} : vector<16x8xf32> to vector<1x8xf32>
    %44 = vector.shape_cast %43 : vector<1x8xf32> to vector<1x8xf32>
    %45 = vector.broadcast %44 : vector<1x8xf32> to vector<16x8xf32>
    %c15_i32_14 = arith.constant 15 : i32
    %46 = tpu.dynamic_rotate %39 by %c15_i32_14 dim 0 : vector<16x8xf32>, i32 -> vector<16x8xf32>
    %c1_i32_15 = arith.constant 1 : i32
    %47 = tpu.dynamic_rotate %39 by %c1_i32_15 dim 0 : vector<16x8xf32>, i32 -> vector<16x8xf32>
    %c15_i32_16 = arith.constant 15 : i32
    %48 = vector.broadcast %c15_i32_16 : i32 to vector<16x8xi32>
    %49 = arith.cmpi slt, %0, %48 : vector<16x8xi32>
    %50 = arith.select %49, %46, %45 : vector<16x8xi1>, vector<16x8xf32>
    %51 = arith.addf %39, %50 : vector<16x8xf32>
    %c1_i32_17 = arith.constant 1 : i32
    %52 = vector.broadcast %c1_i32_17 : i32 to vector<16x8xi32>
    %53 = arith.cmpi sge, %0, %52 : vector<16x8xi32>
    %54 = arith.select %53, %47, %42 : vector<16x8xi1>, vector<16x8xf32>
    %55 = arith.addf %51, %54 : vector<16x8xf32>
    %c14_i32_18 = arith.constant 14 : i32
    %56 = tpu.dynamic_rotate %39 by %c14_i32_18 dim 0 : vector<16x8xf32>, i32 -> vector<16x8xf32>
    %c2_i32_19 = arith.constant 2 : i32
    %57 = tpu.dynamic_rotate %39 by %c2_i32_19 dim 0 : vector<16x8xf32>, i32 -> vector<16x8xf32>
    %c14_i32_20 = arith.constant 14 : i32
    %58 = vector.broadcast %c14_i32_20 : i32 to vector<16x8xi32>
    %59 = arith.cmpi slt, %0, %58 : vector<16x8xi32>
    %60 = arith.select %59, %56, %45 : vector<16x8xi1>, vector<16x8xf32>
    %61 = arith.addf %55, %60 : vector<16x8xf32>
    %c2_i32_21 = arith.constant 2 : i32
    %62 = vector.broadcast %c2_i32_21 : i32 to vector<16x8xi32>
    %63 = arith.cmpi sge, %0, %62 : vector<16x8xi32>
    %64 = arith.select %63, %57, %42 : vector<16x8xi1>, vector<16x8xf32>
    %65 = arith.addf %61, %64 : vector<16x8xf32>
    %cst_22 = arith.constant 2.000000e-01 : f32
    %66 = vector.broadcast %cst_22 : f32 to vector<16x8xf32>
    %67 = arith.mulf %65, %66 : vector<16x8xf32>
    %c1_23 = arith.constant 1 : index
    %c0_24 = arith.constant 0 : index
    %c0_25 = arith.constant 0 : index
    %68 = vector.load %arg4[%c1_23, %c0_24, %c0_25] : memref<2x16x8xf32, #tpu.memory_space<vmem>>, vector<1x16x8xf32>
    %69 = vector.shape_cast %68 : vector<1x16x8xf32> to vector<16x8xf32>
    %70 = vector.shape_cast %67 : vector<16x8xf32> to vector<1x16x8xf32>
    tpu.vector_store %arg4[%c1_23, %c0_24, %c0_25], %70 {strides = array<i32>} : memref<2x16x8xf32, #tpu.memory_space<vmem>>, vector<1x16x8xf32>,
    %71 = arith.subf %39, %67 : vector<16x8xf32>
    %c1_26 = arith.constant 1 : index
    %c0_27 = arith.constant 0 : index
    %c0_28 = arith.constant 0 : index
    %72 = vector.load %arg3[%c1_26, %c0_27, %c0_28] : memref<2x16x8xf32, #tpu.memory_space<vmem>>, vector<1x16x8xf32>
    %73 = vector.shape_cast %72 : vector<1x16x8xf32> to vector<16x8xf32>
    %74 = vector.shape_cast %71 : vector<16x8xf32> to vector<1x16x8xf32>
    tpu.vector_store %arg3[%c1_26, %c0_27, %c0_28], %74 {strides = array<i32>} : memref<2x16x8xf32, #tpu.memory_space<vmem>>, vector<1x16x8xf32>,
    return
  }
  func.func @transform_0(%arg0: i32, %arg1: i32) -> (i32, i32, i32) {
    %c0_i32 = arith.constant 0 : i32
    %c0_i32_0 = arith.constant 0 : i32
    return %arg0, %c0_i32, %arg1 : i32, i32, i32
  }
  func.func @transform_1(%arg0: i32, %arg1: i32) -> (i32, i32, i32) {
    %c0_i32 = arith.constant 0 : i32
    %c0_i32_0 = arith.constant 0 : i32
    return %arg0, %c0_i32, %arg1 : i32, i32, i32
  }
  func.func @transform_2(%arg0: i32, %arg1: i32) -> (i32, i32, i32) {
    %c0_i32 = arith.constant 0 : i32
    %c0_i32_0 = arith.constant 0 : i32
    return %arg0, %c0_i32, %arg1 : i32, i32, i32
  }
}

</mosaic_0001>

<bundles_post_ra>
// kernel: tpu_custom_call.1
= control target key start
LH: loop header
LB: loop body
LE: loop exit
PB: predicated region body
PF: predicated region fallthrough
CT: control target
= control target key end

     0   :  { %v10_v0 = vlaneseq  ;;  %vm69_vm5 = vcmask 64512   ;;  %s293_s0 = inlined_call_operand.vmem [shape: f32[2,16,8], index: 0, kind: input, shape index: {}]   ;;  %s294_s2 = inlined_call_operand.vmem [shape: f32[2,16,8], index: 2, kind: output, shape index: {1}]   ;;  %s295_s1 = inlined_call_operand.vmem [shape: f32[2,16,8], index: 1, kind: output, shape index: {0}]  }
   0x1   :  { %v161_v1 = vld [vmem:[%s293_s0] sm:$0xff]  ;;  %v166_v2 = vld [vmem:[%s293_s0 + $0x8] sm:$0xff]  ;;  %v200_v21 = vld [vmem:[%s293_s0 + $0x10] sm:$0xff] }
   0x2   :  { %v168_v3 = vshrl.u32 %v10_v0, 7  ;;  %v23_v4 = vrot.slane %v161_v1, 1  ;;  %v24_v5 = vrot.slane %v166_v2, 1  ;;  %v28_v6 = vrot.slane %v161_v1, 7  ;;  %v213_v26 = vld [vmem:[%s293_s0 + $0x18] sm:$0xff] }
   0x3   :  { %v29_v7 = vrot.slane %v166_v2, 7  ;;  %v45_v8 = vrot.slane %v161_v1, 2  ;;  %v46_v9 = vrot.slane %v166_v2, 2  ;;  %v50_v10 = vrot.slane %v161_v1, 6 }
   0x4   :  { %v17_v11 = vsub.s32 0, %v168_v3  ;;  %vm25_vm0 = vcmp.lt.s32.totalorder %v168_v3, 7  ;;  %vm30_vm1 = vcmp.lt.s32.totalorder %v168_v3, 1  ;;  %vm39_vm2 = vcmp.ge.s32.totalorder %v168_v3, 1 }
   0x5   :  { %v26_v12 = vsel %vm25_vm0, %v23_v4, %v24_v5  ;;  %v32_v13 = vsel %vm30_vm1, %v29_v7, %v28_v6  ;;  %vm47_vm3 = vcmp.lt.s32.totalorder %v168_v3, 6  ;;  %v51_v14 = vrot.slane %v166_v2, 6 }
   0x6   :  { %v18_v15 = vrot.slane %v161_v1, %v17_v11  ;;  %v37_v16 = vadd.f32 %v26_v12, %v161_v1  ;;  %v48_v17 = vsel %vm47_vm3, %v45_v8, %v46_v9  ;;  %vm52_vm4 = vcmp.lt.s32.totalorder %v168_v3, 2 }
   0x7   :  { %v54_v18 = vsel %vm52_vm4, %v51_v14, %v50_v10  ;;  %vm61_vm6 = vcmp.ge.s32.totalorder %v168_v3, 2  ;;  %v12_v19 = vadd.s32 8, %v168_v3  ;;  %v21_v20 = vsub.s32 7, %v168_v3 }
   0x8   :  { %v41_v22 = vsel %vm39_vm2, %v32_v13, %v18_v15  ;;  %v63_v23 = vsel %vm61_vm6, %v54_v18, %v18_v15  ;;  %v27_v24 = vsel %vm25_vm0, %v24_v5, %v23_v4  ;;  %v31_v25 = vsel %vm30_vm1, %v28_v6, %v29_v7 }
   0x9   :  { %v43_v27 = vadd.f32 %v41_v22, %v37_v16  ;;  %v22_v28 = vrot.slane %v166_v2, %v21_v20  ;;  %vm34_vm7 = vcmp.lt.s32.totalorder %v12_v19, 15  ;;  %v49_v29 = vsel %vm47_vm3, %v46_v9, %v45_v8 }
   0xa   :  { %v53_v30 = vsel %vm52_vm4, %v50_v10, %v51_v14  ;;  %vm56_vm8 = vcmp.lt.s32.totalorder %v12_v19, 14  ;;  %v82_v31 = vrot.slane %v200_v21, %v17_v11  ;;  %v87_v32 = vrot.slane %v200_v21, 1 }
   0xb   :  { %v59_v33 = vadd.f32 %v48_v17, %v43_v27  ;;  %v36_v34 = vsel %vm34_vm7, %v27_v24, %v22_v28  ;;  %v58_v35 = vsel %vm56_vm8, %v49_v29, %v22_v28  ;;  %v88_v36 = vrot.slane %v213_v26, 1 }
   0xc   :  { %v38_v37 = vadd.f32 %v36_v34, %v166_v2  ;;  %v91_v38 = vrot.slane %v200_v21, 7  ;;  %v92_v39 = vrot.slane %v213_v26, 7  ;;  %v103_v40 = vrot.slane %v200_v21, 2 }
   0xd   :  { %v65_v41 = vadd.f32 %v63_v23, %v59_v33  ;;  %v89_v42 = vsel %vm25_vm0, %v87_v32, %v88_v36  ;;  %v104_v43 = vrot.slane %v213_v26, 2  ;;  %v107_v44 = vrot.slane %v200_v21, 6 }
   0xe   :  { %v44_v45 = vadd.f32 %v38_v37, %v31_v25  ;;  %v94_v46 = vsel %vm30_vm1, %v92_v39, %v91_v38  ;;  %v97_v47 = vadd.f32 %v200_v21, %v89_v42  ;;  %v108_v48 = vrot.slane %v213_v26, 6 }
   0xf   :  { %v67_v49 = vmul.f32 0.2, %v65_v41  ;;  %v99_v50 = vsel %vm39_vm2, %v94_v46, %v82_v31  ;;  %v105_v51 = vsel %vm47_vm3, %v103_v40, %v104_v43  ;;  %v86_v52 = vrot.slane %v213_v26, %v21_v20 }
  0x10   :  { %v60_v53 = vadd.f32 %v58_v35, %v44_v45  ;;  %v101_v54 = vadd.f32 %v99_v50, %v97_v47  ;;  %v110_v55 = vsel %vm52_vm4, %v108_v48, %v107_v44  ;;  %v90_v56 = vsel %vm25_vm0, %v88_v36, %v87_v32 }
  0x11   :  { %70 = vst.msk [vmem:[%s294_s2] sm:$0xff] %vm69_vm5, %v67_v49  ;;  %v72_v57 = vsub.f32 %v161_v1, %v67_v49  ;;  %v115_v58 = vsel %vm61_vm6, %v110_v55, %v82_v31  ;;  %v93_v59 = vsel %vm30_vm1, %v91_v38, %v92_v39  ;;  %v96_v60 = vsel %vm34_vm7, %v90_v56, %v86_v52 }
  0x12   :  { %v66_v61 = vadd.f32 %v60_v53, %v53_v30  ;;  %v113_v62 = vadd.f32 %v105_v51, %v101_v54  ;;  %v98_v63 = vadd.f32 %v213_v26, %v96_v60  ;;  %v106_v0 = vsel %vm47_vm3, %v104_v43, %v103_v40 }
  0x13   :  { %74 = vst.msk [vmem:[%s295_s1] sm:$0xff] %vm69_vm5, %v72_v57  ;;  %v112_v1 = vsel %vm56_vm8, %v106_v0, %v86_v52  ;;  %v109_v7 = vsel %vm52_vm4, %v107_v44, %v108_v48 }
  0x14   :  { %v68_v4 = vmul.f32 0.2, %v66_v61  ;;  %v117_v5 = vadd.f32 %v115_v58, %v113_v62  ;;  %v102_v6 = vadd.f32 %v98_v63, %v93_v59 }
  0x16   :  { %71 = vst.msk [vmem:[%s294_s2 + $0x8] sm:$0xff] %vm69_vm5, %v68_v4  ;;  %v73_v8 = vsub.f32 %v166_v2, %v68_v4  ;;  %v119_v9 = vmul.f32 0.2, %v117_v5  ;;  %v114_v10 = vadd.f32 %v112_v1, %v102_v6 }
  0x18   :  { %75 = vst.msk [vmem:[%s295_s1 + $0x8] sm:$0xff] %vm69_vm5, %v73_v8  ;;  %139 = vst.msk [vmem:[%s294_s2 + $0x10] sm:$0xff] %vm69_vm5, %v119_v9  ;;  %v118_v3 = vadd.f32 %v114_v10, %v109_v7  ;;  %v124_v11 = vsub.f32 %v200_v21, %v119_v9 }
  0x1a   :  { %v120_v12 = vmul.f32 0.2, %v118_v3  ;;  %141 = vst.msk [vmem:[%s295_s1 + $0x10] sm:$0xff] %vm69_vm5, %v124_v11 }
  0x1c   :  { %140 = vst.msk [vmem:[%s294_s2 + $0x18] sm:$0xff] %vm69_vm5, %v120_v12  ;;  %v125_v2 = vsub.f32 %v213_v26, %v120_v12 }
  0x1e   :  { %142 = vst.msk [vmem:[%s295_s1 + $0x18] sm:$0xff] %vm69_vm5, %v125_v2 }

</bundles_post_ra>
